<compile_context>
chip_gen: v5e
topology: v5e:2x2
jax: 0.10.0
libtpu: 0.0.40
codegen_flags: <defaults>
</compile_context>

<pallas_src>
import functools

import numpy as np
import jax
import jax.numpy as jnp
from jax import lax
from jax.experimental import pallas as pl
from jax.experimental.pallas import tpu as pltpu


# ----------------------------------------------------------------------------
# Pallas kernels
# ----------------------------------------------------------------------------
def _weight_norm_kernel(v_ref, g_ref, w_ref):
    """w = g * v / ||v||_2 per output channel (lane axis), emitted as bf16.

    v_ref: (K*K*Cin, Cout) f32, g_ref: (1, Cout) f32, w_ref: (K*K*Cin, Cout) bf16.
    """
    v = v_ref[...]
    sq = jnp.sum(v * v, axis=0, keepdims=True)              # (1, Cout)
    w_ref[...] = (v * (g_ref[...] * lax.rsqrt(sq))).astype(w_ref.dtype)


def _wn_conv2d_kernel(*refs, K, TH, W_out, use_halo):
    """One (batch n, output-row tile t) grid step of the conv.

    use_halo=True:
      refs = (xb, xh, w, b, o, xwin, acc)
      xb: (1, TH,  W_out, K*Cin) bf16   body rows [t*TH, t*TH+TH)
      xh: (1, K-1, W_out, K*Cin) bf16   halo rows [t*TH+TH, t*TH+TH+K-1)
    use_halo=False:
      refs = (xb, w, b, o, acc)
      xb: (1, TH+K-1, W_out, K*Cin) bf16  full row window (single row tile)
    w: (K, K*Cin, Cp) bf16   b: (1, Cp) f32   o: (1, TH, W_out, Cp) f32
    xwin: VMEM (TH+K-1, W_out, K*Cin) bf16   acc: VMEM (TH*W_out, Cp) f32
    """
    if use_halo:
        xb_ref, xh_ref, w_ref, b_ref, o_ref, xwin_ref, acc_ref = refs
    else:
        xb_ref, w_ref, b_ref, o_ref, acc_ref = refs
    Cp = o_ref.shape[3]
    KC = xb_ref.shape[3]
    rows = TH * W_out

    # Accumulator initialized with the broadcast bias (fused epilogue add).
    acc_ref[...] = jnp.broadcast_to(b_ref[...], (rows, Cp))

    if use_halo:
        # Stitch body + halo into the (TH+K-1)-row window once per step so the
        # per-tap slices below are cheap, contiguous VMEM reads.
        xwin_ref[pl.ds(0, TH), :, :] = xb_ref[0]
        xwin_ref[pl.ds(TH, K - 1), :, :] = xh_ref[0]

    for kh in range(K):                                     # unrolled: K matmuls
        if use_halo:
            patch = xwin_ref[pl.ds(kh, TH), :, :]           # (TH, W_out, KC)
        else:
            patch = xb_ref[0, pl.ds(kh, TH), :, :]
        # Leading-dim merge; layout no-op when W_out % 16 == 0 (bf16 sublanes).
        patch = patch.reshape(rows, KC)
        acc_ref[...] += jnp.dot(patch, w_ref[kh],
                                preferred_element_type=jnp.float32)

    o_ref[...] = acc_ref[...].reshape(1, TH, W_out, Cp).astype(o_ref.dtype)


# ----------------------------------------------------------------------------
# Tiling plan + pallas_call builders (cached: each shape compiles once)
# ----------------------------------------------------------------------------
def _plan_tiles(h_out, w_out, k, max_rows=512):
    """Row-tile height TH and whether a separate (K-1)-row halo block is used.

    TH divides h_out; when a halo block is used TH is also a multiple of (K-1)
    so the halo's Blocked index map stays integral.  Targets TH*W_out in the
    256-512 row range to amortize per-grid-step overhead.
    """
    halo = k - 1
    cands = [th for th in range(1, h_out + 1)
             if h_out % th == 0 and (halo == 0 or th % halo == 0)]
    if not cands:                      # no aligned tiling: whole-image window
        return h_out, False
    fitting = [th for th in cands if th * w_out <= max_rows]
    th = max(fitting) if fitting else min(cands)
    use_halo = halo > 0 and th < h_out
    return th, use_halo


@functools.lru_cache(maxsize=None)
def _make_weight_norm_call(kkc, cout):
    return pl.pallas_call(
        _weight_norm_kernel,
        out_shape=jax.ShapeDtypeStruct((kkc, cout), jnp.bfloat16),
        in_specs=[pl.BlockSpec(memory_space=pltpu.MemorySpace.VMEM)] * 2,
        out_specs=pl.BlockSpec(memory_space=pltpu.MemorySpace.VMEM),
    )


@functools.lru_cache(maxsize=None)
def _make_conv_call(N, Hp, H_out, W_out, Cin, Cp, K, TH, use_halo):
    KC = K * Cin
    T = H_out // TH
    body_rows = TH if use_halo else TH + (K - 1)
    kernel = functools.partial(_wn_conv2d_kernel, K=K, TH=TH, W_out=W_out,
                               use_halo=use_halo)

    in_specs = [pl.BlockSpec((1, body_rows, W_out, KC),
                             lambda n, t: (n, t, 0, 0))]
    if use_halo:
        halo_step = TH // (K - 1)          # integral by construction
        in_specs.append(pl.BlockSpec(
            (1, K - 1, W_out, KC),
            lambda n, t: (n, (t + 1) * halo_step, 0, 0)))
    in_specs += [
        pl.BlockSpec((K, KC, Cp), lambda n, t: (0, 0, 0)),   # resident weights
        pl.BlockSpec((1, Cp), lambda n, t: (0, 0)),          # resident bias
    ]
    out_specs = pl.BlockSpec((1, TH, W_out, Cp), lambda n, t: (n, t, 0, 0))

    scratch_shapes = []
    if use_halo:
        scratch_shapes.append(pltpu.VMEM((TH + K - 1, W_out, KC), jnp.bfloat16))
    scratch_shapes.append(pltpu.VMEM((TH * W_out, Cp), jnp.float32))

    # Explicit scoped-VMEM budget: double-buffered blocks + scratch + slack.
    bf, f4 = 2, 4
    blocks = (body_rows * W_out * KC * bf
              + (K - 1) * W_out * KC * bf * int(use_halo)
              + K * KC * Cp * bf + Cp * f4 + TH * W_out * Cp * f4)
    scratch_bytes = ((TH + K - 1) * W_out * KC * bf * int(use_halo)
                     + TH * W_out * Cp * f4)
    need = 2 * blocks + scratch_bytes
    vmem_limit = int(min(max(2 * need + (8 << 20), 32 << 20), 56 << 20))

    cost = pl.CostEstimate(
        flops=2 * N * H_out * W_out * Cp * K * KC,
        transcendentals=0,
        bytes_accessed=(N * Hp * W_out * KC * bf + K * KC * Cp * bf
                        + N * H_out * W_out * Cp * f4))

    return pl.pallas_call(
        kernel,
        out_shape=jax.ShapeDtypeStruct((N, H_out, W_out, Cp), jnp.float32),
        grid=(N, T),
        in_specs=in_specs,
        out_specs=out_specs,
        scratch_shapes=scratch_shapes,
        compiler_params=pltpu.CompilerParams(
            dimension_semantics=("parallel", "arbitrary"),
            vmem_limit_bytes=vmem_limit),
        cost_estimate=cost,
    )


@functools.lru_cache(maxsize=None)
def _make_forward(N, Cin, H, W, Cout, K, padding):
    p = padding
    Hp, Wp = H + 2 * p, W + 2 * p
    H_out, W_out = Hp - K + 1, Wp - K + 1
    TH, use_halo = _plan_tiles(H_out, W_out, K)
    Cp = Cout if Cout >= 128 else 128          # lane-pad small Cout: dense vst
    KC = K * Cin
    wn_call = _make_weight_norm_call(K * K * Cin, Cout)
    conv_call = _make_conv_call(N, Hp, H_out, W_out, Cin, Cp, K, TH, use_halo)

    def fwd(x_nchw, v, g, b):
        # ---- weight-norm reparametrization on the MXU-folded layout, bf16 ---
        # v: (Cout, Cin, K, K) -> (kh, kw, Cin, Cout) -> (K*K*Cin, Cout)
        v_t = jnp.transpose(v, (2, 3, 1, 0)).reshape(K * K * Cin, Cout)
        w_flat = wn_call(v_t, g.reshape(1, Cout))
        if Cp != Cout:
            w_flat = jnp.pad(w_flat, ((0, 0), (0, Cp - Cout)))
        w_folded = w_flat.reshape(K, KC, Cp)
        b_p = b if Cp == Cout else jnp.pad(b, (0, Cp - Cout))

        # ---- one-time layout plumbing: NCHW->NHWC, bf16, pad, kw fold -------
        # NOTE: in a stacked RealNVP network keep activations NHWC between
        # layers and hoist these transposes to the network boundary.
        x = jnp.transpose(x_nchw, (0, 2, 3, 1)).astype(jnp.bfloat16)
        if p:
            x = jnp.pad(x, ((0, 0), (p, p), (p, p), (0, 0)))
        if K > 1:
            x_kw = jnp.concatenate(
                [x[:, :, kw:kw + W_out, :] for kw in range(K)], axis=-1)
        else:
            x_kw = x                                     # (N, Hp, W_out, K*Cin)
        x_args = (x_kw, x_kw) if use_halo else (x_kw,)
        y = conv_call(*x_args, w_folded,
                      b_p.reshape(1, Cp).astype(jnp.float32))
        if Cp != Cout:
            y = y[..., :Cout]
        return jnp.transpose(y, (0, 3, 1, 2))            # NHWC -> NCHW

    return jax.jit(fwd)


# ----------------------------------------------------------------------------
# Module mirroring the PyTorch WeightNormConv2d (forward semantics)
# ----------------------------------------------------------------------------
class WeightNormConv2d:
    def __init__(self, key, in_channels, out_channels, kernel_size, padding=0):
        self.kernel_size = kernel_size
        self.padding = padding
        kv, kb = jax.random.split(key)
        fan_in = in_channels * kernel_size * kernel_size
        v = jax.random.normal(
            kv, (out_channels, in_channels, kernel_size, kernel_size),
            jnp.float32) / np.sqrt(fan_in)
        # weight_norm wrapping init: g = ||v|| per output channel -> w == v
        g = jnp.sqrt(jnp.sum(v * v, axis=(1, 2, 3)))
        bound = 1.0 / np.sqrt(fan_in)
        b = jax.random.uniform(kb, (out_channels,), jnp.float32, -bound, bound)
        self.v, self.g, self.b = v, g, b

    def __call__(self, x_nchw):
        N, Cin, H, W = x_nchw.shape
        Cout = self.v.shape[0]
        fwd = _make_forward(N, Cin, H, W, Cout, self.kernel_size, self.padding)
        return fwd(x_nchw, self.v, self.g, self.b)


# ----------------------------------------------------------------------------
# Pure-JAX reference for validation
# ----------------------------------------------------------------------------
def _reference(x, v, g, b, padding):
    norm = jnp.sqrt(jnp.sum(v * v, axis=(1, 2, 3), keepdims=True))
    w = g.reshape(-1, 1, 1, 1) * v / norm
    y = lax.conv_general_dilated(
        x, w, window_strides=(1, 1),
        padding=[(padding, padding), (padding, padding)],
        dimension_numbers=("NCHW", "OIHW", "NCHW"),
        precision=lax.Precision.HIGHEST)
    return y + b.reshape(1, -1, 1, 1)


def _check(y, ref):
    # Tolerance documents the deliberate bf16-MXU-operand choice (f32 accum):
    # ~1e-2 max abs divergence from the f32 reference is expected and accepted.
    assert y.shape == ref.shape
    assert bool(jnp.isfinite(y).all())
    err = float(jnp.max(jnp.abs(y - ref)))
    assert bool(jnp.allclose(y, ref, rtol=2e-2, atol=2e-2)), f"max abs err {err}"


# ----------------------------------------------------------------------------
if __name__ == "__main__":
    key = jax.random.PRNGKey(0)
    k1, k2, k3, k4, k5, k6 = jax.random.split(key, 6)

    # Case 1: small shapes (batch=2, channels=4, spatial=16), 3x3 same conv.
    conv1 = WeightNormConv2d(k1, in_channels=4, out_channels=32,
                             kernel_size=3, padding=1)
    x1 = jax.random.normal(k2, (2, 4, 16, 16), jnp.float32)
    y1 = jax.block_until_ready(conv1(x1))
    _check(y1, _reference(x1, conv1.v, conv1.g, conv1.b, 1))

    # Case 2: lane-dense 128-channel 3x3 conv (the ResidualCNN hot shape);
    # exercises the halo'd row-tiled path (TH=16 -> 512-row tiles).
    conv2 = WeightNormConv2d(k3, in_channels=128, out_channels=128,
                             kernel_size=3, padding=1)
    x2 = jax.random.normal(k4, (2, 128, 32, 32), jnp.float32)
    y2 = jax.block_until_ready(conv2(x2))
    _check(y2, _reference(x2, conv2.v, conv2.g, conv2.b, 1))

    # Case 3: 1x1 conv, no padding (degenerate K path, no halo).
    conv3 = WeightNormConv2d(k5, in_channels=32, out_channels=32,
                             kernel_size=1, padding=0)
    x3 = jax.random.normal(k6, (2, 32, 16, 16), jnp.float32)
    y3 = jax.block_until_ready(conv3(x3))
    _check(y3, _reference(x3, conv3.v, conv3.g, conv3.b, 0))

    print("KERNEL_OK")
</pallas_src>

<mosaic_0001>
module attributes {stable_mosaic.version = 11 : i64} {
  func.func @_weight_norm_kernel(%arg0: memref<36x32xf32, #tpu.memory_space<vmem>>, %arg1: memref<1x32xf32, #tpu.memory_space<vmem>>, %arg2: memref<36x32xbf16, #tpu.memory_space<vmem>>) attributes {dimension_semantics = [], scalar_prefetch = 0 : i64, scratch_operands = 0 : i64, tpu.core_type = #tpu.core_type<tc>} {
    %c0 = arith.constant 0 : index
    %c0_0 = arith.constant 0 : index
    %0 = vector.load %arg0[%c0, %c0_0] : memref<36x32xf32, #tpu.memory_space<vmem>>, vector<36x32xf32>
    %1 = arith.mulf %0, %0 : vector<36x32xf32>
    %cst = arith.constant dense<0.000000e+00> : vector<32xf32>
    %2 = vector.multi_reduction <add>, %1, %cst [0] : vector<36x32xf32> to vector<32xf32>
    %3 = vector.shape_cast %2 : vector<32xf32> to vector<1x32xf32>
    %c0_1 = arith.constant 0 : index
    %c0_2 = arith.constant 0 : index
    %4 = vector.load %arg1[%c0_1, %c0_2] : memref<1x32xf32, #tpu.memory_space<vmem>>, vector<1x32xf32>
    %5 = math.rsqrt %3 : vector<1x32xf32>
    %6 = arith.mulf %4, %5 : vector<1x32xf32>
    %7 = vector.broadcast %6 : vector<1x32xf32> to vector<36x32xf32>
    %8 = arith.mulf %0, %7 : vector<36x32xf32>
    %9 = arith.truncf %8 : vector<36x32xf32> to vector<36x32xbf16>
    %c0_3 = arith.constant 0 : index
    %c0_4 = arith.constant 0 : index
    %10 = vector.load %arg2[%c0_3, %c0_4] : memref<36x32xbf16, #tpu.memory_space<vmem>>, vector<36x32xbf16>
    tpu.vector_store %arg2[%c0_3, %c0_4], %9 {strides = array<i32>} : memref<36x32xbf16, #tpu.memory_space<vmem>>, vector<36x32xbf16>,
    return
  }
}

module attributes {stable_mosaic.version = 11 : i64} {
  func.func @_wn_conv2d_kernel(%arg0: i32, %arg1: i32, %arg2: memref<1x18x16x12xbf16, #tpu.memory_space<vmem>>, %arg3: memref<3x12x128xbf16, #tpu.memory_space<vmem>>, %arg4: memref<1x128xf32, #tpu.memory_space<vmem>>, %arg5: memref<1x16x16x128xf32, #tpu.memory_space<vmem>>, %arg6: memref<256x128xf32, #tpu.memory_space<vmem>>) attributes {dimension_semantics = [#tpu.dimension_semantics<parallel>, #tpu.dimension_semantics<arbitrary>], iteration_bounds = array<i64: 2, 1>, scalar_prefetch = 0 : i64, scratch_operands = 1 : i64, tpu.core_type = #tpu.core_type<tc>, window_params = [{transform_indices = @transform_0, window_bounds = array<i64: 1, 18, 16, 12>}, {pipeline_mode = #tpu.pipeline_mode<synchronous>, transform_indices = @transform_1, window_bounds = array<i64: 3, 12, 128>}, {pipeline_mode = #tpu.pipeline_mode<synchronous>, transform_indices = @transform_2, window_bounds = array<i64: 1, 128>}, {transform_indices = @transform_3, window_bounds = array<i64: 1, 16, 16, 128>}]} {
    %c0 = arith.constant 0 : index
    %c0_0 = arith.constant 0 : index
    %0 = vector.load %arg4[%c0, %c0_0] : memref<1x128xf32, #tpu.memory_space<vmem>>, vector<1x128xf32>
    %1 = vector.shape_cast %0 : vector<1x128xf32> to vector<1x128xf32>
    %2 = vector.broadcast %1 : vector<1x128xf32> to vector<256x128xf32>
    %c0_1 = arith.constant 0 : index
    %c0_2 = arith.constant 0 : index
    %3 = vector.load %arg6[%c0_1, %c0_2] : memref<256x128xf32, #tpu.memory_space<vmem>>, vector<256x128xf32>
    tpu.vector_store %arg6[%c0_1, %c0_2], %2 {strides = array<i32>} : memref<256x128xf32, #tpu.memory_space<vmem>>, vector<256x128xf32>,
    %c0_3 = arith.constant 0 : index
    %c0_4 = arith.constant 0 : index
    %c0_5 = arith.constant 0 : index
    %c0_6 = arith.constant 0 : index
    %4 = vector.load %arg2[%c0_3, %c0_4, %c0_5, %c0_6] : memref<1x18x16x12xbf16, #tpu.memory_space<vmem>>, vector<1x16x16x12xbf16>
    %5 = vector.shape_cast %4 : vector<1x16x16x12xbf16> to vector<16x16x12xbf16>
    %6 = vector.shape_cast %5 : vector<16x16x12xbf16> to vector<256x12xbf16>
    %c0_7 = arith.constant 0 : index
    %c0_8 = arith.constant 0 : index
    %7 = vector.load %arg6[%c0_7, %c0_8] : memref<256x128xf32, #tpu.memory_space<vmem>>, vector<256x128xf32>
    %c0_9 = arith.constant 0 : index
    %c0_10 = arith.constant 0 : index
    %c0_11 = arith.constant 0 : index
    %8 = vector.load %arg3[%c0_9, %c0_10, %c0_11] : memref<3x12x128xbf16, #tpu.memory_space<vmem>>, vector<1x12x128xbf16>
    %9 = vector.shape_cast %8 : vector<1x12x128xbf16> to vector<12x128xbf16>
    %cst = arith.constant dense<0.000000e+00> : vector<256x128xf32>
    %10 = tpu.matmul %6, %9, %cst {dimension_numbers = #tpu.dot_dimension_numbers<[1], [0], [0], [1], [0, 0, 1, 1], [], []>} : vector<256x12xbf16>, vector<12x128xbf16>, vector<256x128xf32> -> vector<256x128xf32>
    %11 = arith.addf %7, %10 : vector<256x128xf32>
    %c0_12 = arith.constant 0 : index
    %c0_13 = arith.constant 0 : index
    %12 = vector.load %arg6[%c0_12, %c0_13] : memref<256x128xf32, #tpu.memory_space<vmem>>, vector<256x128xf32>
    tpu.vector_store %arg6[%c0_12, %c0_13], %11 {strides = array<i32>} : memref<256x128xf32, #tpu.memory_space<vmem>>, vector<256x128xf32>,
    %c0_14 = arith.constant 0 : index
    %c1 = arith.constant 1 : index
    %c0_15 = arith.constant 0 : index
    %c0_16 = arith.constant 0 : index
    %13 = vector.load %arg2[%c0_14, %c1, %c0_15, %c0_16] : memref<1x18x16x12xbf16, #tpu.memory_space<vmem>>, vector<1x16x16x12xbf16>
    %14 = vector.shape_cast %13 : vector<1x16x16x12xbf16> to vector<16x16x12xbf16>
    %15 = vector.shape_cast %14 : vector<16x16x12xbf16> to vector<256x12xbf16>
    %c0_17 = arith.constant 0 : index
    %c0_18 = arith.constant 0 : index
    %16 = vector.load %arg6[%c0_17, %c0_18] : memref<256x128xf32, #tpu.memory_space<vmem>>, vector<256x128xf32>
    %c1_19 = arith.constant 1 : index
    %c0_20 = arith.constant 0 : index
    %c0_21 = arith.constant 0 : index
    %17 = vector.load %arg3[%c1_19, %c0_20, %c0_21] : memref<3x12x128xbf16, #tpu.memory_space<vmem>>, vector<1x12x128xbf16>
    %18 = vector.shape_cast %17 : vector<1x12x128xbf16> to vector<12x128xbf16>
    %cst_22 = arith.constant dense<0.000000e+00> : vector<256x128xf32>
    %19 = tpu.matmul %15, %18, %cst_22 {dimension_numbers = #tpu.dot_dimension_numbers<[1], [0], [0], [1], [0, 0, 1, 1], [], []>} : vector<256x12xbf16>, vector<12x128xbf16>, vector<256x128xf32> -> vector<256x128xf32>
    %20 = arith.addf %16, %19 : vector<256x128xf32>
    %c0_23 = arith.constant 0 : index
    %c0_24 = arith.constant 0 : index
    %21 = vector.load %arg6[%c0_23, %c0_24] : memref<256x128xf32, #tpu.memory_space<vmem>>, vector<256x128xf32>
    tpu.vector_store %arg6[%c0_23, %c0_24], %20 {strides = array<i32>} : memref<256x128xf32, #tpu.memory_space<vmem>>, vector<256x128xf32>,
    %c0_25 = arith.constant 0 : index
    %c2 = arith.constant 2 : index
    %c0_26 = arith.constant 0 : index
    %c0_27 = arith.constant 0 : index
    %22 = vector.load %arg2[%c0_25, %c2, %c0_26, %c0_27] : memref<1x18x16x12xbf16, #tpu.memory_space<vmem>>, vector<1x16x16x12xbf16>
    %23 = vector.shape_cast %22 : vector<1x16x16x12xbf16> to vector<16x16x12xbf16>
    %24 = vector.shape_cast %23 : vector<16x16x12xbf16> to vector<256x12xbf16>
    %c0_28 = arith.constant 0 : index
    %c0_29 = arith.constant 0 : index
    %25 = vector.load %arg6[%c0_28, %c0_29] : memref<256x128xf32, #tpu.memory_space<vmem>>, vector<256x128xf32>
    %c2_30 = arith.constant 2 : index
    %c0_31 = arith.constant 0 : index
    %c0_32 = arith.constant 0 : index
    %26 = vector.load %arg3[%c2_30, %c0_31, %c0_32] : memref<3x12x128xbf16, #tpu.memory_space<vmem>>, vector<1x12x128xbf16>
    %27 = vector.shape_cast %26 : vector<1x12x128xbf16> to vector<12x128xbf16>
    %cst_33 = arith.constant dense<0.000000e+00> : vector<256x128xf32>
    %28 = tpu.matmul %24, %27, %cst_33 {dimension_numbers = #tpu.dot_dimension_numbers<[1], [0], [0], [1], [0, 0, 1, 1], [], []>} : vector<256x12xbf16>, vector<12x128xbf16>, vector<256x128xf32> -> vector<256x128xf32>
    %29 = arith.addf %25, %28 : vector<256x128xf32>
    %c0_34 = arith.constant 0 : index
    %c0_35 = arith.constant 0 : index
    %30 = vector.load %arg6[%c0_34, %c0_35] : memref<256x128xf32, #tpu.memory_space<vmem>>, vector<256x128xf32>
    tpu.vector_store %arg6[%c0_34, %c0_35], %29 {strides = array<i32>} : memref<256x128xf32, #tpu.memory_space<vmem>>, vector<256x128xf32>,
    %c0_36 = arith.constant 0 : index
    %c0_37 = arith.constant 0 : index
    %31 = vector.load %arg6[%c0_36, %c0_37] : memref<256x128xf32, #tpu.memory_space<vmem>>, vector<256x128xf32>
    %32 = vector.shape_cast %31 : vector<256x128xf32> to vector<1x16x16x128xf32>
    %c0_38 = arith.constant 0 : index
    %c0_39 = arith.constant 0 : index
    %c0_40 = arith.constant 0 : index
    %c0_41 = arith.constant 0 : index
    %33 = vector.load %arg5[%c0_38, %c0_39, %c0_40, %c0_41] : memref<1x16x16x128xf32, #tpu.memory_space<vmem>>, vector<1x16x16x128xf32>
    tpu.vector_store %arg5[%c0_38, %c0_39, %c0_40, %c0_41], %32 {strides = array<i32>} : memref<1x16x16x128xf32, #tpu.memory_space<vmem>>, vector<1x16x16x128xf32>,
    return
  }
  func.func @transform_0(%arg0: i32, %arg1: i32) -> (i32, i32, i32, i32) {
    %c0_i32 = arith.constant 0 : i32
    %c0_i32_0 = arith.constant 0 : i32
    %c0_i32_1 = arith.constant 0 : i32
    return %arg0, %arg1, %c0_i32, %c0_i32_0 : i32, i32, i32, i32
  }
  func.func @transform_1(%arg0: i32, %arg1: i32) -> (i32, i32, i32) {
    %c0_i32 = arith.constant 0 : i32
    %c0_i32_0 = arith.constant 0 : i32
    %c0_i32_1 = arith.constant 0 : i32
    %c0_i32_2 = arith.constant 0 : i32
    return %c0_i32, %c0_i32_0, %c0_i32_1 : i32, i32, i32
  }
  func.func @transform_2(%arg0: i32, %arg1: i32) -> (i32, i32) {
    %c0_i32 = arith.constant 0 : i32
    %c0_i32_0 = arith.constant 0 : i32
    %c0_i32_1 = arith.constant 0 : i32
    return %c0_i32, %c0_i32_0 : i32, i32
  }
  func.func @transform_3(%arg0: i32, %arg1: i32) -> (i32, i32, i32, i32) {
    %c0_i32 = arith.constant 0 : i32
    %c0_i32_0 = arith.constant 0 : i32
    %c0_i32_1 = arith.constant 0 : i32
    return %arg0, %arg1, %c0_i32, %c0_i32_0 : i32, i32, i32, i32
  }
}

</mosaic_0001>

<bundles_post_ra>
// kernel: fwd.2
= control target key start
LH: loop header
LB: loop body
LE: loop exit
PB: predicated region body
PF: predicated region fallthrough
CT: control target
= control target key end

     0   :  { %vm21_vm0 = vcmask 261120   ;;  %vm29_vm1 = vcmask 257024   ;;  %vm67_vm5 = vcmask 254976   ;;  %s128_s0 = inlined_call_operand.vmem [shape: f32[36,32], index: 0, kind: input, shape index: {}]   ;;  %s129_s1 = inlined_call_operand.vmem [shape: f32[1,32], index: 1, kind: input, shape index: {}]   ;;  %s130_s2 = inlined_call_operand.vmem [shape: bf16[36,32], index: 2, kind: output, shape index: {}]  }
   0x1   :  { %v11_v0 = vld [vmem:[%s128_s0] sm:$0xff]  ;;  %v12_v1 = vld [vmem:[%s128_s0 + $0x8] sm:$0xff]  ;;  %v13_v2 = vld [vmem:[%s128_s0 + $0x10] sm:$0xff] }
   0x2   :  { %v14_v3 = vld [vmem:[%s128_s0 + $0x18] sm:$0xff]  ;;  %v15_v4 = vld [vmem:[%s128_s0 + $0x20] sm:$0xf]  ;;  %v16_v5 = vmul.f32 %v11_v0, %v11_v0  ;;  %v17_v6 = vmul.f32 %v12_v1, %v12_v1  ;;  %v18_v7 = vmul.f32 %v13_v2, %v13_v2 }
   0x3   :  { %v19_v8 = vmul.f32 %v14_v3, %v14_v3  ;;  %v20_v9 = vmul.f32 %v15_v4, %v15_v4  ;;  %v38_v30 = vld [vmem:[%s129_s1] sm:$0x1] }
   0x4   :  { %v22_v10 = vsel %vm21_vm0, %v16_v5, 0.0  ;;  %v23_v11 = vsel %vm21_vm0, %v17_v6, 0.0  ;;  %v25_v12 = vsel %vm21_vm0, %v18_v7, 0.0 }
   0x5   :  { %v24_v13 = vadd.f32 %v23_v11, %v22_v10  ;;  %v27_v14 = vsel %vm21_vm0, %v19_v8, 0.0  ;;  %v30_v16 = vsel %vm29_vm1, %v20_v9, 0.0 }
   0x7   :  { %v26_v15 = vadd.f32 %v25_v12, %v24_v13 }
   0x9   :  { %v28_v17 = vadd.f32 %v27_v14, %v26_v15 }
   0xb   :  { %v31_v18 = vadd.f32 %v30_v16, %v28_v17 }
   0xd   :  { %v32_v19 = vrot.slane %v31_v18, 4 }
   0xf   :  { %v33_v20 = vadd.f32 %v32_v19, %v31_v18 }
  0x11   :  { %v34_v21 = vrot.slane %v33_v20, 2 }
  0x13   :  { %v35_v22 = vadd.f32 %v34_v21, %v33_v20 }
  0x15   :  { %v36_v23 = vrot.slane %v35_v22, 1 }
  0x17   :  { %v37_v24 = vadd.f32 %v36_v23, %v35_v22 }
  0x19   :  { %73 = vrsqrt.f32 %v37_v24  ;;  %vm45_vm2 = vweird.f32 %v37_v24 }
  0x1f   :  { %v74_v25 = vpop.eup %73 }
  0x20   :  { %v40_v26 = vmul.f32 %v74_v25, %v37_v24  ;;  %vm46_vm3 = vweird.f32 %v74_v25 }
  0x21   :  { %vm47_vm4 = vmor %vm45_vm2, %vm46_vm3 }
  0x22   :  { %v41_v27 = vmul.f32 %v74_v25, %v40_v26 }
  0x24   :  { %v42_v28 = vmul.f32 0.5, %v41_v27 }
  0x26   :  { %v43_v29 = vsub.f32 1.5, %v42_v28 }
  0x28   :  { %v44_v31 = vmul.f32 %v74_v25, %v43_v29 }
  0x2a   :  { %v48_v32 = vsel %vm47_vm4, %v74_v25, %v44_v31 }
  0x2b   :  { %v49_v33 = vmul.f32 %v48_v32, %v38_v30 }
  0x2d   :  { %v51_v34 = vperm.slane %v49_v33, 0 }
  0x2f   :  { %v53_v35 = vmul.f32 %v51_v34, %v11_v0  ;;  %v54_v36 = vmul.f32 %v51_v34, %v12_v1  ;;  %v55_v37 = vmul.f32 %v51_v34, %v13_v2  ;;  %v56_v38 = vmul.f32 %v51_v34, %v14_v3 }
  0x30   :  { %v57_v39 = vmul.f32 %v51_v34, %v15_v4 }
  0x31   :  { %v58_v40 = vpack.c.bf16 %v53_v35, %v53_v35  ;;  %v59_v41 = vpack.c.bf16 %v54_v36, %v54_v36  ;;  %v60_v42 = vpack.c.bf16 %v55_v37, %v55_v37  ;;  %v61_v43 = vpack.c.bf16 %v56_v38, %v56_v38 }
  0x32   :  { %v62_v44 = vpack.c.bf16 %v57_v39, %v57_v39 }
  0x33   :  { %63 = vst.msk [vmem:[%s130_s2] sm:$0xf] %vm29_vm1, %v58_v40 }
  0x34   :  { %64 = vst.msk [vmem:[%s130_s2 + $0x4] sm:$0xf] %vm29_vm1, %v59_v41 }
  0x35   :  { %65 = vst.msk [vmem:[%s130_s2 + $0x8] sm:$0xf] %vm29_vm1, %v60_v42 }
  0x36   :  { %66 = vst.msk [vmem:[%s130_s2 + $0xc] sm:$0xf] %vm29_vm1, %v61_v43 }
  0x37   :  { %68 = vst.msk [vmem:[%s130_s2 + $0x10] sm:$0x3] %vm67_vm5, %v62_v44 }

// kernel: fwd.3
= control target key start
LH: loop header
LB: loop body
LE: loop exit
PB: predicated region body
PF: predicated region fallthrough
CT: control target
= control target key end

     0   :  { %s1938_s12 = smov 0   ;;  %s1940_s13 = smov 0   ;;  %s2213_s0 = inlined_call_operand.vmem [shape: bf16[2,18,16,12], index: 0, kind: input, shape index: {}]   ;;  %s2214_s1 = inlined_call_operand.vmem [shape: bf16[3,12,128], index: 1, kind: input, shape index: {}]   ;;  %s2215_s2 = inlined_call_operand.vmem [shape: f32[1,128], index: 2, kind: input, shape index: {}]   ;;  %s2216_s3 = inlined_call_operand.vmem [shape: f32[2,16,16,128], index: 3, kind: output, shape index: {}]  }
   0x1   :  { %s1942_s14 = smov 0  }
   0x2 LB: > { %s25_s15 = sadd.s32 1, %s1912_s13  ;;  %p1487_p0 = scmp.ge.s32.totalorder %s1916_s14, 1  ;;  %s1916_s14 = sphi %s1942_s14, %s13_s14   ;;  %s1912_s13 = sphi %s1940_s13, %s2218_s13   ;;  %s1908_s12 = sphi %s1938_s12, %s2217_s12  }
   0x3   : > { %p27_p1 = scmp.ge.s32.totalorder %s25_s15, 2  ;;  %p159_p2 = scmp.lt.s32.totalorder %s1916_s14, 3 }
   0x5   : > { %s2220_s15 = smov (%p27_p1, %s25_s15), 0  ;;  %p160_p3 = pnand %p1487_p0, %p159_p2 }
   0x6   : > { %p194_p4 = scmp.lt.s32.totalorder (!%p160_p3), %s1908_s12, 1 }
   0x7   : > { %163 = sbr.rel (%p160_p3) target bundleno = 340 (0x154), region = 32 }
   0xc   : > { %v1557_v0 = vld [vmem:[%s2214_s1] sm:$0xf]  ;;  %v1830_v1 = vld [vmem:[%s2214_s1] sm:$0x30]  ;;  %vm452_vm0 = vcmask 1045504   ;;  %s2222_s12 = smov (!%p194_p4, %s1908_s12), 1 }
   0xd   : > { %v1558_v2 = vor.u32 %v1830_v1, %v1557_v0  ;;  %v1675_v3 = vld [vmem:[%s2214_s1 + $0x8] sm:$0xf]  ;;  %v1847_v4 = vld [vmem:[%s2214_s1 + $0x8] sm:$0x30]  ;;  %v1793_v5 = vld [vmem:[%s2214_s1 + $0x10] sm:$0xf] }
   0xe   : > { %v1676_v6 = vor.u32 %v1847_v4, %v1675_v3  ;;  %v1864_v7 = vld [vmem:[%s2214_s1 + $0x10] sm:$0x30]  ;;  %s1868_s28 = smul.u32 144, %s2222_s12  ;;  %vm403_vm1 = vcmask 97280   ;;  %v2052_v44 = vld [vmem:[%s2215_s2] ss:$0 sm:$0xff] }
   0xf   : > { %v454_v8 = vsel %vm452_vm0, %v1558_v2, 0  ;;  %v1794_v9 = vor.u32 %v1864_v7, %v1793_v5  ;;  %s1813_s7 = sshll.u32 %s2222_s12, 8 }
  0x10   : > { %463 = vmatpush.bf16.msra.mxu0 %v454_v8  ;;  %1865 = vmatpush.bf16.msra.mxu3 %v454_v8  ;;  %v811_v10 = vsel %vm452_vm0, %v1676_v6, 0  ;;  %s1983_s4 = scalar_lea.vmem %s2213_s0, %s1868_s28  ;;  %s2069_s10 = scalar_lea.vmem %s2216_s3, %s1813_s7 }
  0x11   : > { %820 = vmatpush.bf16.msra.mxu1 %v811_v10  ;;  %v1168_v11 = vsel %vm452_vm0, %v1794_v9, 0  ;;  %v1814_v12 = vld [vmem:[%s1983_s4] sm:$0xff]  ;;  %v1831_v14 = vld [vmem:[%s1983_s4 + $0x8] sm:$0xff]  ;;  %v1848_v15 = vld [vmem:[%s1983_s4 + $0x10] sm:$0xff] }
  0x12   : > { %1177 = vmatpush.bf16.msra.mxu2 %v1168_v11  ;;  %v1826_v13 = vld [vmem:[%s1983_s4 + $0x60] sm:$0xff]  ;;  %v1815_v16 = vld [vmem:[%s1983_s4 + $0x8] sm:$0xff]  ;;  %v1832_v18 = vld [vmem:[%s1983_s4 + $0x10] sm:$0xff] }
  0x13   : > { %1559 = vmatmul.msk.bf16.vlgmr.msra.gmra.mxu0 %vm403_vm1, %v1814_v12  ;;  %1571 = vmatmul.msk.bf16.vlgmr.msra.gmra.mxu3 %vm403_vm1, %v1826_v13  ;;  %v1827_v17 = vld [vmem:[%s1983_s4 + $0x68] sm:$0xff]  ;;  %v1849_v19 = vld [vmem:[%s1983_s4 + $0x18] sm:$0xff]  ;;  %v1816_v20 = vld [vmem:[%s1983_s4 + $0x10] sm:$0xff] }
  0x14   : > { %1866 = vmatpush.bf16.msrb.mxu3 %v811_v10  ;;  %1677 = vmatmul.msk.bf16.vlgmr.msra.gmra.mxu1 %vm403_vm1, %v1831_v14  ;;  %v1828_v21 = vld [vmem:[%s1983_s4 + $0x70] sm:$0xff]  ;;  %v1833_v22 = vld [vmem:[%s1983_s4 + $0x18] sm:$0xff]  ;;  %v1850_v23 = vld [vmem:[%s1983_s4 + $0x20] sm:$0xff] }
  0x15   : > { %1795 = vmatmul.msk.bf16.vlgmr.msra.gmra.mxu2 %vm403_vm1, %v1848_v15  ;;  %v1817_v24 = vld [vmem:[%s1983_s4 + $0x18] sm:$0xff]  ;;  %v1834_v26 = vld [vmem:[%s1983_s4 + $0x20] sm:$0xff]  ;;  %v1851_v27 = vld [vmem:[%s1983_s4 + $0x28] sm:$0xff] }
  0x16   : > { %v1829_v25 = vld [vmem:[%s1983_s4 + $0x78] sm:$0xff]  ;;  %v1818_v28 = vld [vmem:[%s1983_s4 + $0x20] sm:$0xff]  ;;  %v1843_v29 = vld [vmem:[%s1983_s4 + $0x68] sm:$0xff] }
  0x17   : > { %v1835_v30 = vld [vmem:[%s1983_s4 + $0x28] sm:$0xff]  ;;  %v1852_v31 = vld [vmem:[%s1983_s4 + $0x30] sm:$0xff]  ;;  %v1853_v35 = vld [vmem:[%s1983_s4 + $0x38] sm:$0xff] }
  0x18   : > { %1867 = vmatpush.bf16.msra.mxu3 %v1168_v11  ;;  %v1819_v32 = vld [vmem:[%s1983_s4 + $0x28] sm:$0xff]  ;;  %v1844_v33 = vld [vmem:[%s1983_s4 + $0x70] sm:$0xff]  ;;  %v1845_v37 = vld [vmem:[%s1983_s4 + $0x78] sm:$0xff] }
  0x19   : > { %v1836_v34 = vld [vmem:[%s1983_s4 + $0x30] sm:$0xff]  ;;  %v1837_v38 = vld [vmem:[%s1983_s4 + $0x38] sm:$0xff]  ;;  %v1854_v39 = vld [vmem:[%s1983_s4 + $0x40] sm:$0xff] }
  0x1a   : > { %v1820_v36 = vld [vmem:[%s1983_s4 + $0x30] sm:$0xff]  ;;  %v1821_v40 = vld [vmem:[%s1983_s4 + $0x38] sm:$0xff]  ;;  %v1846_v41 = vld [vmem:[%s1983_s4 + $0x80] sm:$0xff] }
  0x1b   : > { %v1838_v42 = vld [vmem:[%s1983_s4 + $0x40] sm:$0xff]  ;;  %v1855_v43 = vld [vmem:[%s1983_s4 + $0x48] sm:$0xff]  ;;  %v1860_v46 = vld [vmem:[%s1983_s4 + $0x70] sm:$0xff] }
  0x1c   : > { %v1822_v45 = vld [vmem:[%s1983_s4 + $0x40] sm:$0xff]  ;;  %v1839_v48 = vld [vmem:[%s1983_s4 + $0x48] sm:$0xff]  ;;  %v1856_v49 = vld [vmem:[%s1983_s4 + $0x50] sm:$0xff] }
  0x1d   : > { %v1823_v62 = vld [vmem:[%s1983_s4 + $0x48] sm:$0xff]  ;;  %v1861_v63 = vld [vmem:[%s1983_s4 + $0x78] sm:$0xff]  ;;  %v1840_v2 = vld [vmem:[%s1983_s4 + $0x50] sm:$0xff] }
  0x1e   : > { %v1857_v3 = vld [vmem:[%s1983_s4 + $0x58] sm:$0xff] }
  0x23   : > { %1560 = vmatmul.msk.bf16.gmra.mxu0 %vm403_vm1, %v1815_v16  ;;  %1572 = vmatmul.msk.bf16.gmra.mxu3 %vm403_vm1, %v1827_v17  ;;  %v1824_v16 = vld [vmem:[%s1983_s4 + $0x50] sm:$0xff]  ;;  %v1862_v17 = vld [vmem:[%s1983_s4 + $0x80] sm:$0xff] }
  0x24   : > { %1678 = vmatmul.msk.bf16.gmra.mxu1 %vm403_vm1, %v1832_v18 }
  0x25   : > { %1796 = vmatmul.msk.bf16.gmra.mxu2 %vm403_vm1, %v1849_v19 }
  0x33   : > { %1561 = vmatmul.msk.bf16.gmra.mxu0 %vm403_vm1, %v1816_v20  ;;  %1573 = vmatmul.msk.bf16.gmra.mxu3 %vm403_vm1, %v1828_v21  ;;  %v1841_v20 = vld [vmem:[%s1983_s4 + $0x58] sm:$0xff]  ;;  %v1858_v21 = vld [vmem:[%s1983_s4 + $0x60] sm:$0xff] }
  0x34   : > { %1679 = vmatmul.msk.bf16.gmra.mxu1 %vm403_vm1, %v1833_v22 }
  0x35   : > { %1797 = vmatmul.msk.bf16.gmra.mxu2 %vm403_vm1, %v1850_v23 }
  0x43   : > { %1562 = vmatmul.msk.bf16.gmra.mxu0 %vm403_vm1, %v1817_v24  ;;  %1574 = vmatmul.msk.bf16.gmra.mxu3 %vm403_vm1, %v1829_v25 }
  0x44   : > { %1680 = vmatmul.msk.bf16.gmra.mxu1 %vm403_vm1, %v1834_v26 }
  0x45   : > { %1798 = vmatmul.msk.bf16.gmra.mxu2 %vm403_vm1, %v1851_v27 }
  0x53   : > { %1563 = vmatmul.msk.bf16.gmra.mxu0 %vm403_vm1, %v1818_v28  ;;  %1689 = vmatmul.msk.bf16.vlgmr.msrb.gmra.mxu3 %vm403_vm1, %v1843_v29 }
  0x54   : > { %1681 = vmatmul.msk.bf16.gmra.mxu1 %vm403_vm1, %v1835_v30 }
  0x55   : > { %1799 = vmatmul.msk.bf16.gmra.mxu2 %vm403_vm1, %v1852_v31 }
  0x63   : > { %1564 = vmatmul.msk.bf16.gmra.mxu0 %vm403_vm1, %v1819_v32  ;;  %1690 = vmatmul.msk.bf16.gmra.mxu3 %vm403_vm1, %v1844_v33 }
  0x64   : > { %1682 = vmatmul.msk.bf16.gmra.mxu1 %vm403_vm1, %v1836_v34  ;;  %v1825_v34 = vld [vmem:[%s1983_s4 + $0x58] sm:$0xff] }
  0x65   : > { %1800 = vmatmul.msk.bf16.gmra.mxu2 %vm403_vm1, %v1853_v35  ;;  %v1863_v35 = vld [vmem:[%s1983_s4 + $0x88] sm:$0xff] }
  0x73   : > { %1565 = vmatmul.msk.bf16.gmra.mxu0 %vm403_vm1, %v1820_v36  ;;  %1691 = vmatmul.msk.bf16.gmra.mxu3 %vm403_vm1, %v1845_v37 }
  0x74   : > { %1683 = vmatmul.msk.bf16.gmra.mxu1 %vm403_vm1, %v1837_v38  ;;  %v1842_v38 = vld [vmem:[%s1983_s4 + $0x60] sm:$0xff] }
  0x75   : > { %1801 = vmatmul.msk.bf16.gmra.mxu2 %vm403_vm1, %v1854_v39  ;;  %v1859_v39 = vld [vmem:[%s1983_s4 + $0x68] sm:$0xff] }
  0x83   : > { %1566 = vmatmul.msk.bf16.gmra.mxu0 %vm403_vm1, %v1821_v40  ;;  %1692 = vmatmul.msk.bf16.gmra.mxu3 %vm403_vm1, %v1846_v41 }
  0x84   : > { %1684 = vmatmul.msk.bf16.gmra.mxu1 %vm403_vm1, %v1838_v42 }
  0x85   : > { %1802 = vmatmul.msk.bf16.gmra.mxu2 %vm403_vm1, %v1855_v43 }
  0x90   : > { %v465_v47 = vpop.f32.mrf.mxu0 }
  0x91   : > { %v545_v50 = vadd.f32 %v2052_v44, %v465_v47  ;;  %v822_v51 = vpop.f32.mrf.mxu1 }
  0x93   : > { %1567 = vmatmul.msk.bf16.gmra.mxu0 %vm403_vm1, %v1822_v45  ;;  %1807 = vmatmul.msk.bf16.vlgmr.msra.gmra.mxu3 %vm403_vm1, %v1860_v46  ;;  %v902_v52 = vadd.f32 %v822_v51, %v545_v50 }
  0x94   : > { %1685 = vmatmul.msk.bf16.gmra.mxu1 %vm403_vm1, %v1839_v48 }
  0x95   : > { %1803 = vmatmul.msk.bf16.gmra.mxu2 %vm403_vm1, %v1856_v49 }
  0x96   : > { %v2064_v53 = vpop.f32.mrf.mxu3 }
  0x98   : > { %v1179_v54 = vpop.f32.mrf.mxu2  ;;  %v467_v56 = vpop.f32.mrf.mxu0 }
  0x99   : > { %v1259_v55 = vadd.f32 %v1179_v54, %v902_v52  ;;  %v824_v57 = vpop.f32.mrf.mxu1  ;;  %v546_v58 = vadd.f32 %v2052_v44, %v467_v56 }
  0x9b   : > { %1355 = vst [vmem:[%s2069_s10] sm:$0xff] %v1259_v55  ;;  %v903_v59 = vadd.f32 %v824_v57, %v546_v58 }
  0x9e   : > { %v2073_v60 = vpop.f32.mrf.mxu3 }
  0xa0   : > { %v1181_v61 = vpop.f32.mrf.mxu2  ;;  %v470_v1 = vpop.f32.mrf.mxu0 }
  0xa1   : > { %v1260_v0 = vadd.f32 %v1181_v61, %v903_v59  ;;  %v547_v4 = vadd.f32 %v2052_v44, %v470_v1  ;;  %v827_v5 = vpop.f32.mrf.mxu1 }
  0xa3   : > { %1356 = vst [vmem:[%s2069_s10 + $0x8] sm:$0xff] %v1260_v0  ;;  %1568 = vmatmul.msk.bf16.gmra.mxu0 %vm403_vm1, %v1823_v62  ;;  %1808 = vmatmul.msk.bf16.gmra.mxu3 %vm403_vm1, %v1861_v63  ;;  %v904_v6 = vadd.f32 %v827_v5, %v547_v4 }
  0xa4   : > { %1686 = vmatmul.msk.bf16.gmra.mxu1 %vm403_vm1, %v1840_v2 }
  0xa5   : > { %1804 = vmatmul.msk.bf16.gmra.mxu2 %vm403_vm1, %v1857_v3 }
  0xa6   : > { %v2085_v7 = vpop.f32.mrf.mxu3 }
  0xa8   : > { %v1184_v8 = vpop.f32.mrf.mxu2  ;;  %v472_v10 = vpop.f32.mrf.mxu0 }
  0xa9   : > { %v1261_v9 = vadd.f32 %v1184_v8, %v904_v6  ;;  %v829_v11 = vpop.f32.mrf.mxu1  ;;  %v548_v12 = vadd.f32 %v2052_v44, %v472_v10 }
  0xab   : > { %1357 = vst [vmem:[%s2069_s10 + $0x10] sm:$0xff] %v1261_v9  ;;  %v905_v13 = vadd.f32 %v829_v11, %v548_v12 }
  0xae   : > { %v2089_v14 = vpop.f32.mrf.mxu3 }
  0xb0   : > { %v1186_v15 = vpop.f32.mrf.mxu2  ;;  %v475_v19 = vpop.f32.mrf.mxu0 }
  0xb1   : > { %v1262_v18 = vadd.f32 %v1186_v15, %v905_v13  ;;  %v549_v22 = vadd.f32 %v2052_v44, %v475_v19  ;;  %v832_v23 = vpop.f32.mrf.mxu1 }
  0xb3   : > { %1358 = vst [vmem:[%s2069_s10 + $0x18] sm:$0xff] %v1262_v18  ;;  %1569 = vmatmul.msk.bf16.gmra.mxu0 %vm403_vm1, %v1824_v16  ;;  %1809 = vmatmul.msk.bf16.gmra.mxu3 %vm403_vm1, %v1862_v17  ;;  %v906_v24 = vadd.f32 %v832_v23, %v549_v22 }
  0xb4   : > { %1687 = vmatmul.msk.bf16.gmra.mxu1 %vm403_vm1, %v1841_v20 }
  0xb5   : > { %1805 = vmatmul.msk.bf16.gmra.mxu2 %vm403_vm1, %v1858_v21 }
  0xb6   : > { %v2101_v25 = vpop.f32.mrf.mxu3 }
  0xb8   : > { %v1189_v26 = vpop.f32.mrf.mxu2  ;;  %v477_v28 = vpop.f32.mrf.mxu0 }
  0xb9   : > { %v1263_v27 = vadd.f32 %v1189_v26, %v906_v24  ;;  %v834_v29 = vpop.f32.mrf.mxu1  ;;  %v550_v30 = vadd.f32 %v2052_v44, %v477_v28 }
  0xbb   : > { %1359 = vst [vmem:[%s2069_s10 + $0x20] sm:$0xff] %v1263_v27  ;;  %v907_v31 = vadd.f32 %v834_v29, %v550_v30 }
  0xbe   : > { %v2105_v32 = vpop.f32.mrf.mxu3 }
  0xc0   : > { %v1191_v33 = vpop.f32.mrf.mxu2  ;;  %v480_v37 = vpop.f32.mrf.mxu0 }
  0xc1   : > { %v1264_v36 = vadd.f32 %v1191_v33, %v907_v31  ;;  %v551_v40 = vadd.f32 %v2052_v44, %v480_v37  ;;  %v837_v41 = vpop.f32.mrf.mxu1 }
  0xc3   : > { %1360 = vst [vmem:[%s2069_s10 + $0x28] sm:$0xff] %v1264_v36  ;;  %1570 = vmatmul.msk.bf16.gmra.mxu0 %vm403_vm1, %v1825_v34  ;;  %1810 = vmatmul.msk.bf16.gmra.mxu3 %vm403_vm1, %v1863_v35  ;;  %v908_v42 = vadd.f32 %v837_v41, %v551_v40 }
  0xc4   : > { %1688 = vmatmul.msk.bf16.gmra.mxu1 %vm403_vm1, %v1842_v38 }
  0xc5   : > { %1806 = vmatmul.msk.bf16.gmra.mxu2 %vm403_vm1, %v1859_v39 }
  0xc6   : > { %v2117_v43 = vpop.f32.mrf.mxu3 }
  0xc8   : > { %v1194_v45 = vpop.f32.mrf.mxu2  ;;  %v482_v47 = vpop.f32.mrf.mxu0 }
  0xc9   : > { %v1265_v46 = vadd.f32 %v1194_v45, %v908_v42  ;;  %v839_v48 = vpop.f32.mrf.mxu1  ;;  %v552_v49 = vadd.f32 %v2052_v44, %v482_v47 }
  0xcb   : > { %1361 = vst [vmem:[%s2069_s10 + $0x30] sm:$0xff] %v1265_v46  ;;  %v909_v50 = vadd.f32 %v839_v48, %v552_v49 }
  0xce   : > { %v2121_v51 = vpop.f32.mrf.mxu3 }
  0xd0   : > { %v1196_v52 = vpop.f32.mrf.mxu2  ;;  %v485_v55 = vpop.f32.mrf.mxu0 }
  0xd1   : > { %v1266_v54 = vadd.f32 %v1196_v52, %v909_v50  ;;  %v553_v56 = vadd.f32 %v2052_v44, %v485_v55  ;;  %v842_v57 = vpop.f32.mrf.mxu1 }
  0xd3   : > { %1362 = vst [vmem:[%s2069_s10 + $0x38] sm:$0xff] %v1266_v54  ;;  %v910_v58 = vadd.f32 %v842_v57, %v553_v56 }
  0xd6   : > { %v2125_v59 = vpop.f32.mrf.mxu3 }
  0xd8   : > { %v1199_v61 = vpop.f32.mrf.mxu2  ;;  %v487_v63 = vpop.f32.mrf.mxu0 }
  0xd9   : > { %v1267_v62 = vadd.f32 %v1199_v61, %v910_v58  ;;  %v844_v0 = vpop.f32.mrf.mxu1  ;;  %v554_v1 = vadd.f32 %v2052_v44, %v487_v63  ;;  %v569_v61 = vadd.f32 %v2052_v44, %v2064_v53 }
  0xdb   : > { %1363 = vst [vmem:[%s2069_s10 + $0x40] sm:$0xff] %v1267_v62  ;;  %v911_v2 = vadd.f32 %v844_v0, %v554_v1  ;;  %v926_v63 = vadd.f32 %v2125_v59, %v569_v61 }
  0xde   : > { %v2129_v3 = vpop.f32.mrf.mxu3 }
  0xe0   : > { %v1201_v4 = vpop.f32.mrf.mxu2  ;;  %v490_v6 = vpop.f32.mrf.mxu0 }
  0xe1   : > { %v1268_v5 = vadd.f32 %v1201_v4, %v911_v2  ;;  %v555_v8 = vadd.f32 %v2052_v44, %v490_v6  ;;  %v847_v9 = vpop.f32.mrf.mxu1 }
  0xe3   : > { %1364 = vst [vmem:[%s2069_s10 + $0x48] sm:$0xff] %v1268_v5  ;;  %v912_v10 = vadd.f32 %v847_v9, %v555_v8  ;;  %v570_v9 = vadd.f32 %v2052_v44, %v2073_v60 }
  0xe5   : > { %v927_v53 = vadd.f32 %v2129_v3, %v570_v9  ;;  %v576_v9 = vadd.f32 %v2052_v44, %v2121_v51 }
  0xe6   : > { %v2133_v11 = vpop.f32.mrf.mxu3 }
  0xe8   : > { %v1204_v12 = vpop.f32.mrf.mxu2  ;;  %v492_v15 = vpop.f32.mrf.mxu0 }
  0xe9   : > { %v1269_v13 = vadd.f32 %v1204_v12, %v912_v10  ;;  %v849_v16 = vpop.f32.mrf.mxu1  ;;  %v556_v17 = vadd.f32 %v2052_v44, %v492_v15 }
  0xeb   : > { %1365 = vst [vmem:[%s2069_s10 + $0x50] sm:$0xff] %v1269_v13  ;;  %v913_v18 = vadd.f32 %v849_v16, %v556_v17 }
  0xee   : > { %v2137_v19 = vpop.f32.mrf.mxu3 }
  0xf0   : > { %v1206_v20 = vpop.f32.mrf.mxu2  ;;  %v495_v22 = vpop.f32.mrf.mxu0 }
  0xf1   : > { %v1270_v21 = vadd.f32 %v1206_v20, %v913_v18  ;;  %v557_v23 = vadd.f32 %v2052_v44, %v495_v22  ;;  %v852_v24 = vpop.f32.mrf.mxu1  ;;  %v571_v20 = vadd.f32 %v2052_v44, %v2085_v7 }
  0xf3   : > { %1366 = vst [vmem:[%s2069_s10 + $0x58] sm:$0xff] %v1270_v21  ;;  %v914_v26 = vadd.f32 %v852_v24, %v557_v23  ;;  %v928_v60 = vadd.f32 %v2133_v11, %v571_v20 }
  0xf6   : > { %v2141_v27 = vpop.f32.mrf.mxu3 }
  0xf8   : > { %v1209_v28 = vpop.f32.mrf.mxu2  ;;  %v497_v30 = vpop.f32.mrf.mxu0 }
  0xf9   : > { %v1271_v29 = vadd.f32 %v1209_v28, %v914_v26  ;;  %v854_v31 = vpop.f32.mrf.mxu1  ;;  %v558_v33 = vadd.f32 %v2052_v44, %v497_v30  ;;  %v572_v30 = vadd.f32 %v2052_v44, %v2089_v14 }
  0xfb   : > { %1367 = vst [vmem:[%s2069_s10 + $0x60] sm:$0xff] %v1271_v29  ;;  %v915_v34 = vadd.f32 %v854_v31, %v558_v33  ;;  %v929_v7 = vadd.f32 %v2137_v19, %v572_v30 }
  0xfe   : > { %v2145_v35 = vpop.f32.mrf.mxu3 }
 0x100   : > { %v1211_v36 = vpop.f32.mrf.mxu2  ;;  %v500_v38 = vpop.f32.mrf.mxu0 }
 0x101   : > { %v1272_v37 = vadd.f32 %v1211_v36, %v915_v34  ;;  %v559_v39 = vadd.f32 %v2052_v44, %v500_v38  ;;  %v857_v40 = vpop.f32.mrf.mxu1 }
 0x103   : > { %1368 = vst [vmem:[%s2069_s10 + $0x68] sm:$0xff] %v1272_v37  ;;  %v916_v41 = vadd.f32 %v857_v40, %v559_v39  ;;  %v573_v40 = vadd.f32 %v2052_v44, %v2101_v25 }
 0x105   : > { %v930_v14 = vadd.f32 %v2141_v27, %v573_v40 }
 0x106   : > { %v2149_v42 = vpop.f32.mrf.mxu3 }
 0x108   : > { %v1214_v45 = vpop.f32.mrf.mxu2  ;;  %v502_v47 = vpop.f32.mrf.mxu0 }
 0x109   : > { %v1273_v46 = vadd.f32 %v1214_v45, %v916_v41  ;;  %v859_v48 = vpop.f32.mrf.mxu1  ;;  %v560_v49 = vadd.f32 %v2052_v44, %v502_v47 }
 0x10b   : > { %1369 = vst [vmem:[%s2069_s10 + $0x70] sm:$0xff] %v1273_v46  ;;  %v917_v50 = vadd.f32 %v859_v48, %v560_v49 }
 0x10e   : > { %v2153_v52 = vpop.f32.mrf.mxu3 }
 0x110   : > { %v1216_v54 = vpop.f32.mrf.mxu2  ;;  %v505_v56 = vpop.f32.mrf.mxu0 }
 0x111   : > { %v1274_v55 = vadd.f32 %v1216_v54, %v917_v50  ;;  %v561_v57 = vadd.f32 %v2052_v44, %v505_v56  ;;  %v862_v58 = vpop.f32.mrf.mxu1  ;;  %v574_v54 = vadd.f32 %v2052_v44, %v2105_v32 }
 0x113   : > { %1370 = vst [vmem:[%s2069_s10 + $0x78] sm:$0xff] %v1274_v55  ;;  %v918_v62 = vadd.f32 %v862_v58, %v561_v57  ;;  %v931_v25 = vadd.f32 %v2145_v35, %v574_v54 }
 0x116   : > { %v1239_v0 = vpop.f32.mrf.mxu3 }
 0x117   : > { %v1283_v2 = vadd.f32 %v1239_v0, %v926_v63  ;;  %v575_v63 = vadd.f32 %v2052_v44, %v2117_v43  ;;  %v933_v43 = vadd.f32 %v2153_v52, %v576_v9 }
 0x118   : > { %v1219_v1 = vpop.f32.mrf.mxu2  ;;  %v507_v5 = vpop.f32.mrf.mxu0 }
 0x119   : > { %v1275_v4 = vadd.f32 %v1219_v1, %v918_v62  ;;  %1379 = vst [vmem:[%s2069_s10 + $0xc0] sm:$0xff] %v1283_v2  ;;  %v864_v6 = vpop.f32.mrf.mxu1  ;;  %v562_v8 = vadd.f32 %v2052_v44, %v507_v5  ;;  %v932_v32 = vadd.f32 %v2149_v42, %v575_v63 }
 0x11b   : > { %1371 = vst [vmem:[%s2069_s10 + $0x80] sm:$0xff] %v1275_v4  ;;  %v919_v10 = vadd.f32 %v864_v6, %v562_v8 }
 0x11e   : > { %v1241_v12 = vpop.f32.mrf.mxu3 }
 0x11f   : > { %v1284_v13 = vadd.f32 %v1241_v12, %v927_v53 }
 0x120   : > { %v1221_v59 = vpop.f32.mrf.mxu2  ;;  %v510_v16 = vpop.f32.mrf.mxu0 }
 0x121   : > { %v1276_v15 = vadd.f32 %v1221_v59, %v919_v10  ;;  %1380 = vst [vmem:[%s2069_s10 + $0xc8] sm:$0xff] %v1284_v13  ;;  %v563_v17 = vadd.f32 %v2052_v44, %v510_v16  ;;  %v867_v18 = vpop.f32.mrf.mxu1 }
 0x123   : > { %1372 = vst [vmem:[%s2069_s10 + $0x88] sm:$0xff] %v1276_v15  ;;  %v920_v21 = vadd.f32 %v867_v18, %v563_v17 }
 0x126   : > { %v1244_v3 = vpop.f32.mrf.mxu3 }
 0x127   : > { %v1285_v23 = vadd.f32 %v1244_v3, %v928_v60 }
 0x128   : > { %v1224_v22 = vpop.f32.mrf.mxu2  ;;  %v512_v26 = vpop.f32.mrf.mxu0 }
 0x129   : > { %v1277_v24 = vadd.f32 %v1224_v22, %v920_v21  ;;  %1381 = vst [vmem:[%s2069_s10 + $0xd0] sm:$0xff] %v1285_v23  ;;  %v869_v28 = vpop.f32.mrf.mxu1  ;;  %v564_v29 = vadd.f32 %v2052_v44, %v512_v26 }
 0x12b   : > { %1373 = vst [vmem:[%s2069_s10 + $0x90] sm:$0xff] %v1277_v24  ;;  %v921_v31 = vadd.f32 %v869_v28, %v564_v29 }
 0x12e   : > { %v1246_v33 = vpop.f32.mrf.mxu3 }
 0x12f   : > { %v1286_v34 = vadd.f32 %v1246_v33, %v929_v7 }
 0x130   : > { %v1226_v11 = vpop.f32.mrf.mxu2  ;;  %v515_v37 = vpop.f32.mrf.mxu0 }
 0x131   : > { %v1278_v36 = vadd.f32 %v1226_v11, %v921_v31  ;;  %1382 = vst [vmem:[%s2069_s10 + $0xd8] sm:$0xff] %v1286_v34  ;;  %v565_v38 = vadd.f32 %v2052_v44, %v515_v37  ;;  %v872_v39 = vpop.f32.mrf.mxu1 }
 0x133   : > { %1374 = vst [vmem:[%s2069_s10 + $0x98] sm:$0xff] %v1278_v36  ;;  %v922_v41 = vadd.f32 %v872_v39, %v565_v38 }
 0x136   : > { %v1249_v19 = vpop.f32.mrf.mxu3 }
 0x137   : > { %v1287_v46 = vadd.f32 %v1249_v19, %v930_v14 }
 0x138   : > { %v1229_v45 = vpop.f32.mrf.mxu2  ;;  %v517_v48 = vpop.f32.mrf.mxu0 }
 0x139   : > { %v1279_v47 = vadd.f32 %v1229_v45, %v922_v41  ;;  %1383 = vst [vmem:[%s2069_s10 + $0xe0] sm:$0xff] %v1287_v46  ;;  %v874_v49 = vpop.f32.mrf.mxu1  ;;  %v566_v50 = vadd.f32 %v2052_v44, %v517_v48 }
 0x13b   : > { %1375 = vst [vmem:[%s2069_s10 + $0xa0] sm:$0xff] %v1279_v47  ;;  %v923_v55 = vadd.f32 %v874_v49, %v566_v50 }
 0x13e   : > { %v1251_v56 = vpop.f32.mrf.mxu3 }
 0x13f   : > { %v1288_v57 = vadd.f32 %v1251_v56, %v931_v25 }
 0x140   : > { %v1231_v27 = vpop.f32.mrf.mxu2  ;;  %v520_v61 = vpop.f32.mrf.mxu0 }
 0x141   : > { %v1280_v58 = vadd.f32 %v1231_v27, %v923_v55  ;;  %1384 = vst [vmem:[%s2069_s10 + $0xe8] sm:$0xff] %v1288_v57  ;;  %v567_v62 = vadd.f32 %v2052_v44, %v520_v61  ;;  %v877_v0 = vpop.f32.mrf.mxu1 }
 0x143   : > { %1376 = vst [vmem:[%s2069_s10 + $0xa8] sm:$0xff] %v1280_v58  ;;  %v924_v1 = vadd.f32 %v877_v0, %v567_v62 }
 0x146   : > { %v1254_v35 = vpop.f32.mrf.mxu3 }
 0x147   : > { %v1289_v4 = vadd.f32 %v1254_v35, %v932_v32 }
 0x148   : > { %v1234_v2 = vpop.f32.mrf.mxu2  ;;  %v522_v6 = vpop.f32.mrf.mxu0 }
 0x149   : > { %v1281_v5 = vadd.f32 %v1234_v2, %v924_v1  ;;  %1385 = vst [vmem:[%s2069_s10 + $0xf0] sm:$0xff] %v1289_v4  ;;  %v568_v8 = vadd.f32 %v2052_v44, %v522_v6  ;;  %v879_v53 = vpop.f32.mrf.mxu1 }
 0x14b   : > { %1377 = vst [vmem:[%s2069_s10 + $0xb0] sm:$0xff] %v1281_v5  ;;  %v925_v10 = vadd.f32 %v879_v53, %v568_v8 }
 0x14e   : > { %v1256_v12 = vpop.f32.mrf.mxu3 }
 0x14f   : > { %v1290_v59 = vadd.f32 %v1256_v12, %v933_v43 }
 0x150   : > { %v1236_v42 = vpop.f32.mrf.mxu2 }
 0x151   : > { %v1282_v13 = vadd.f32 %v1236_v42, %v925_v10  ;;  %1386 = vst [vmem:[%s2069_s10 + $0xf8] sm:$0xff] %v1290_v59 }
 0x153   : > { %1378 = vst [vmem:[%s2069_s10 + $0xb8] sm:$0xff] %v1282_v13 }
 0x154 PF: > { %s13_s14 = sadd.s32 1, %s1916_s14   ;;  %s2217_s12 = smov %s1912_s13 }
 0x155   : > { %p10_p5 = scmp.ge.s32.totalorder %s13_s14, 4   ;;  %s2218_s13 = smov %s2220_s15 }
 0x157   :  { %12 = sbr.rel (!%p10_p5) target bundleno = 2 (0x2), region = 66 }

</bundles_post_ra>
